<compile_context>
chip_gen: v7x
topology: tpu7x:2x2x1
jax: 0.10.0
libtpu: 0.0.40
codegen_flags: <defaults>
</compile_context>

<pallas_src>
import math
import numpy as np
import jax
import jax.numpy as jnp
from jax.experimental import pallas as pl
from jax.experimental.pallas import tpu as pltpu


def make_pe_table(d_model: int, max_len: int = 5000) -> jnp.ndarray:
    """Host-side reference PE buffer (matches the torch module), shape (max_len, 1, d_model)."""
    position = jnp.arange(max_len, dtype=jnp.float32)[:, None]            # (L, 1)
    div_term = jnp.exp(
        jnp.arange(0, d_model, 2, dtype=jnp.float32) * (-np.log(10000.0) / d_model)
    )                                                                      # (D/2,)
    pe = jnp.zeros((max_len, d_model), dtype=jnp.float32)
    pe = pe.at[:, 0::2].set(jnp.sin(position * div_term))
    pe = pe.at[:, 1::2].set(jnp.cos(position * div_term))
    return pe[:, None, :]                                                  # (L, 1, D)


def _vmem_budget():
    """(vmem_limit_bytes, per_tile_target_bytes) tuned per TPU generation."""
    cap = 64 << 20                          # conservative default = v7x physical VMEM
    try:
        info = pltpu.get_tpu_info()
        cap = int(getattr(info, "vmem_capacity_bytes", cap) or cap)
    except Exception:
        pass
    if cap >= (96 << 20):                   # v5e / v6e: 128 MiB physical
        return 48 << 20, 6 << 20
    return 32 << 20, 4 << 20                # v7x: 64 MiB physical


def _choose_block_rows(R: int, row_bytes: int, itemsize: int, target_tile_bytes: int) -> int:
    """Largest divisor of R that is a multiple of the dtype sublane pack (or R itself)
    and fits the per-tile budget (budget pre-scaled for 2x in + 2x out double buffers
    plus f32 temporaries); prefer an even grid length >= 2 for v7x's two TCs."""
    sub = {4: 8, 2: 16, 1: 32}.get(itemsize, 8)
    cands = [d for d in range(1, R + 1) if R % d == 0 and (d % sub == 0 or d == R)]
    fitting = [d for d in cands if d * row_bytes <= target_tile_bytes] or [min(cands)]
    even = [d for d in fitting if (R // d) >= 2 and (R // d) % 2 == 0]
    multi = [d for d in fitting if (R // d) >= 2]
    if even:
        return max(even)
    if multi:
        return max(multi)
    return max(fitting)


def _lane_constants(D: int, BD: int, g: int) -> jnp.ndarray:
    """Per-lane constants for the packed (R, g*BD) view.

    lane l -> position offset p_off = l // BD, feature d = (l % BD) % D
      angle(row, lane) = (row*g + p_off) * div(d) + phase(d)
                       = row * scale[l] + bias[l]
    with scale = g*div and bias = p_off*div + phase (phase = 0 even / pi/2 odd,
    since cos(x) == sin(x + pi/2)). Padded to 8 sublanes for clean (8,128) layout.
    """
    lanes = g * BD
    lane = np.arange(lanes)
    p_off = (lane // BD).astype(np.float64)
    d = (lane % BD) % D
    div = np.exp(((d // 2) * 2).astype(np.float64) * (-math.log(10000.0) / D))
    phase = np.where(d % 2 == 0, 0.0, math.pi / 2.0)
    consts = np.zeros((8, lanes), dtype=np.float32)
    consts[0] = g * div
    consts[1] = p_off * div + phase
    return jnp.asarray(consts)


def _make_kernel(p: float, training: bool, block_r: int, lanes: int):
    apply_dropout = training and p > 0.0
    drop_all = apply_dropout and p >= 1.0
    if apply_dropout and not drop_all:
        inv_keep = 1.0 / (1.0 - p)
        thresh_py = min(int(p * (2.0 ** 32)), (1 << 32) - 1)   # guard p -> 1.0
    else:
        inv_keep, thresh_py = 1.0, 0

    def kernel(seed_ref, const_ref, x_ref, o_ref):
        # const_ref: (8, lanes) resident constants; x_ref/o_ref: (block_r, lanes) tile.
        scale = const_ref[0:1, :]                                  # (1, lanes) f32
        bias = const_ref[1:2, :]                                   # (1, lanes) f32

        row = jax.lax.broadcasted_iota(jnp.int32, (block_r, lanes), 0)
        r_global = (pl.program_id(0) * block_r + row).astype(jnp.float32)
        pe = jnp.sin(r_global * scale + bias)                      # one transcendental / element

        x = x_ref[...]
        y = x + pe.astype(x.dtype)                                 # bf16-native add on v6e/v7x inputs

        if apply_dropout:
            if drop_all:
                y = jnp.zeros_like(y)
            else:
                # NOTE: mask depends on the tiling (seed + program_id); the grid is 1-D.
                pltpu.prng_seed(seed_ref[0] + pl.program_id(0))
                bits = pltpu.bitcast(pltpu.prng_random_bits(y.shape), jnp.uint32)
                keep = bits >= jnp.uint32(thresh_py)
                y = jnp.where(keep, y * inv_keep, jnp.zeros_like(y))

        o_ref[...] = y.astype(o_ref.dtype)

    return kernel


def positional_encoding_forward(
    x: jnp.ndarray,
    *,
    p: float = 0.1,
    training: bool = False,
    seed: int = 0,
    block_rows: int | None = None,
):
    """x: (S, B, D).  Returns dropout(x + PE[:S]) with the same shape/dtype."""
    S, B, D = x.shape
    BD = B * D

    # Lane-dense packing: g consecutive positions per view row so last dim % 128 == 0.
    g = 128 // math.gcd(BD, 128)
    if S % g != 0:
        g = 1   # TODO(synk): ragged S falls back to a sub-128 lane view (masked stores, still correct).
    R, lanes = S // g, g * BD
    x2 = x.reshape(R, lanes)

    vmem_limit, tile_target = _vmem_budget()
    if block_rows is None:
        block_rows = _choose_block_rows(R, lanes * x2.dtype.itemsize, x2.dtype.itemsize, tile_target)
    assert R % block_rows == 0, "block_rows must divide the packed row count"

    consts = _lane_constants(D, BD, g)
    seed_arr = jnp.array([seed], dtype=jnp.int32)
    kernel = _make_kernel(p, training, block_rows, lanes)

    out2 = pl.pallas_call(
        kernel,
        out_shape=jax.ShapeDtypeStruct((R, lanes), x.dtype),
        grid_spec=pltpu.PrefetchScalarGridSpec(
            num_scalar_prefetch=1,
            grid=(R // block_rows,),
            in_specs=[
                pl.BlockSpec((8, lanes), lambda i, seed: (0, 0)),            # per-lane constants (resident)
                pl.BlockSpec((block_rows, lanes), lambda i, seed: (i, 0)),   # x tile
            ],
            out_specs=pl.BlockSpec((block_rows, lanes), lambda i, seed: (i, 0)),
        ),
        compiler_params=pltpu.CompilerParams(
            dimension_semantics=("parallel",),
            vmem_limit_bytes=vmem_limit,
        ),
    )(seed_arr, consts, x2)

    return out2.reshape(S, B, D)


if __name__ == "__main__":
    # Small shapes consistent with the module: seq=16, batch=2, d_model=32.
    S, B, D = 16, 2, 32
    key = jax.random.PRNGKey(0)
    x = jax.random.normal(key, (S, B, D), dtype=jnp.float32)

    # Eval-mode forward (dropout is identity in eval, matching module.eval()).
    # TODO(synk): training-mode dropout uses the TPU hardware PRNG and cannot
    # bit-match torch's RNG stream; it is implemented but not exercised here.
    out = positional_encoding_forward(x, p=0.1, training=False)
    out = jax.block_until_ready(out)

    # Pure-JAX reference check (eval mode).
    pe = make_pe_table(D, max_len=5000)
    ref = x + pe[:S]
    np.testing.assert_allclose(np.asarray(out), np.asarray(ref), rtol=1e-4, atol=1e-4)

    print("KERNEL_OK")
</pallas_src>

<mosaic_0001>
module attributes {stable_mosaic.version = 11 : i64} {
  func.func @kernel(%arg0: i32, %arg1: memref<1xi32, #tpu.memory_space<smem>>, %arg2: memref<8x128xf32, #tpu.memory_space<vmem>>, %arg3: memref<8x128xf32, #tpu.memory_space<vmem>>, %arg4: memref<8x128xf32, #tpu.memory_space<vmem>>) attributes {dimension_semantics = [#tpu.dimension_semantics<parallel>], iteration_bounds = array<i64: 1>, scalar_prefetch = 1 : i64, scratch_operands = 0 : i64, tpu.core_type = #tpu.core_type<tc>, window_params = [{pipeline_mode = #tpu.pipeline_mode<synchronous>, transform_indices = @transform_0, window_bounds = array<i64: 8, 128>}, {transform_indices = @transform_1, window_bounds = array<i64: 8, 128>}, {transform_indices = @transform_2, window_bounds = array<i64: 8, 128>}]} {
    %c0 = arith.constant 0 : index
    %c0_0 = arith.constant 0 : index
    %0 = vector.load %arg2[%c0, %c0_0] : memref<8x128xf32, #tpu.memory_space<vmem>>, vector<1x128xf32>
    %c1 = arith.constant 1 : index
    %c0_1 = arith.constant 0 : index
    %1 = vector.load %arg2[%c1, %c0_1] : memref<8x128xf32, #tpu.memory_space<vmem>>, vector<1x128xf32>
    %2 = tpu.iota {dimensions = array<i32: 0>} : vector<8x128xi32>
    %c8_i32 = arith.constant 8 : i32
    %3 = arith.muli %arg0, %c8_i32 : i32
    %4 = vector.broadcast %3 : i32 to vector<8x128xi32>
    %5 = arith.addi %4, %2 : vector<8x128xi32>
    %6 = arith.sitofp %5 : vector<8x128xi32> to vector<8x128xf32>
    %7 = vector.broadcast %0 : vector<1x128xf32> to vector<8x128xf32>
    %8 = arith.mulf %6, %7 : vector<8x128xf32>
    %9 = vector.broadcast %1 : vector<1x128xf32> to vector<8x128xf32>
    %10 = arith.addf %8, %9 : vector<8x128xf32>
    %11 = math.sin %10 : vector<8x128xf32>
    %c0_2 = arith.constant 0 : index
    %c0_3 = arith.constant 0 : index
    %12 = vector.load %arg3[%c0_2, %c0_3] : memref<8x128xf32, #tpu.memory_space<vmem>>, vector<8x128xf32>
    %13 = arith.addf %12, %11 : vector<8x128xf32>
    %c0_4 = arith.constant 0 : index
    %c0_5 = arith.constant 0 : index
    %14 = vector.load %arg4[%c0_4, %c0_5] : memref<8x128xf32, #tpu.memory_space<vmem>>, vector<8x128xf32>
    tpu.vector_store %arg4[%c0_4, %c0_5], %13 {strides = array<i32>} : memref<8x128xf32, #tpu.memory_space<vmem>>, vector<8x128xf32>,
    return
  }
  func.func @transform_0(%arg0: i32, %arg1: memref<1xi32, #tpu.memory_space<smem>>) -> (i32, i32) {
    %c0_i32 = arith.constant 0 : i32
    %c0_i32_0 = arith.constant 0 : i32
    %c0_i32_1 = arith.constant 0 : i32
    return %c0_i32, %c0_i32_0 : i32, i32
  }
  func.func @transform_1(%arg0: i32, %arg1: memref<1xi32, #tpu.memory_space<smem>>) -> (i32, i32) {
    %c0_i32 = arith.constant 0 : i32
    %c0_i32_0 = arith.constant 0 : i32
    return %arg0, %c0_i32 : i32, i32
  }
  func.func @transform_2(%arg0: i32, %arg1: memref<1xi32, #tpu.memory_space<smem>>) -> (i32, i32) {
    %c0_i32 = arith.constant 0 : i32
    %c0_i32_0 = arith.constant 0 : i32
    return %arg0, %c0_i32 : i32, i32
  }
}

</mosaic_0001>

<bundles_post_ra>
// kernel: tpu_custom_call.1
= control target key start
LH: loop header
LB: loop body
LE: loop exit
PB: predicated region body
PF: predicated region fallthrough
CT: control target
= control target key end

     0   :  { %9 = vsyncpa [#allocation5], 0  ;;  %s360_s0 = inlined_call_operand.<no memory space> [shape: s32[1], index: 0, kind: input, shape index: {}]   ;;  %s361_s1 = inlined_call_operand.hbm [shape: f32[8,128], index: 1, kind: input, shape index: {}]   ;;  %s362_s2 = inlined_call_operand.hbm [shape: f32[8,128], index: 2, kind: input, shape index: {}]   ;;  %s363_s3 = inlined_call_operand.hbm [shape: f32[8,128], index: 3, kind: output, shape index: {}]  }
   0x1   :  { %10 = vsyncpa [#allocation8], 0 }
   0x2   :  { %11 = vsyncpa [#allocation6], 0  ;;  %s274_s12 = smov [#allocation4]   ;;  %s275_s14 = smov [#allocation7]  }
   0x3   :  { %s18_s13 = sshll.u32 %s274_s12, 4  ;;  %s28_s15 = sshll.u32 %s275_s14, 4  ;;  %s19_s13 = int_to_ptr.vmem [resolvable:$true] %s18_s13  ;;  %s29_s15 = int_to_ptr.vmem [resolvable:$true] %s28_s15 }
   0x4   :  { %s202_s17 = scalar_lea.hbm %s361_s1, 128 }
   0x5   :  { %p203_p0 = scmp.ne.s32.totalorder %s361_s1, %s202_s17  ;;  %p206_p1 = scmp.lt.u32.totalorder %s202_s17, %s361_s1 }
   0x7   :  { %p208_p2 = pnand %p206_p1, %p203_p0 }
   0x9   :  { %211 = shalt.err (!%p208_p2)
}
   0xa   :  { %s212_s22 = scalar_lea.vmem %s19_s13, 128  ;;  %p217_p4 = scmp.lt.s32.totalorder %s19_s13, %s19_s13 }
   0xb   :  { %p213_p3 = scmp.ne.s32.totalorder %s19_s13, %s212_s22  ;;  %p218_p5 = scmp.lt.s32.totalorder %s212_s22, %s212_s22 }
   0xd   :  { %p219_p6 = por %p218_p5, %p217_p4 }
   0xf   :  { %p220_p7 = pnand %p219_p6, %p213_p3 }
  0x11   :  { %223 = shalt.err (!%p220_p7)
}
  0x12   :  { %21 = dma.hbm_to_vmem [thread:$0]  %s361_s1, 128, %s19_s13, [#allocation5]  }
  0x13   :  { %s224_s27 = scalar_lea.hbm %s362_s2, 128 }
  0x14   :  { %p225_p8 = scmp.ne.s32.totalorder %s362_s2, %s224_s27  ;;  %p228_p9 = scmp.lt.u32.totalorder %s224_s27, %s362_s2 }
  0x16   :  { %p230_p10 = pnand %p228_p9, %p225_p8 }
  0x18   :  { %233 = shalt.err (!%p230_p10)
}
  0x19   :  { %s234_s5 = scalar_lea.vmem %s29_s15, 128  ;;  %p239_p12 = scmp.lt.s32.totalorder %s29_s15, %s29_s15 }
  0x1a   :  { %p235_p11 = scmp.ne.s32.totalorder %s29_s15, %s234_s5  ;;  %p240_p13 = scmp.lt.s32.totalorder %s234_s5, %s234_s5 }
  0x1c   :  { %p241_p0 = por %p240_p13, %p239_p12 }
  0x1e   :  { %p242_p1 = pnand %p241_p0, %p235_p11 }
  0x20   :  { %245 = shalt.err (!%p242_p1)
}
  0x21   :  { %31 = dma.hbm_to_vmem [thread:$0]  %s362_s2, 128, %s29_s15, [#allocation8]  }
  0x22   :  { %268 = dma.done.wait [#allocation5], 128  }
  0x23   :  { %269 = vsyncadd [#allocation5], 4294967168 }
  0x24   :  { %270 = dma.done.wait [#allocation8], 128  }
  0x25   :  { %271 = vsyncadd [#allocation8], 4294967168  ;;  %v40_v0 = vlaneseq  ;;  %v179_v3 = vld [vmem:[#allocation4] ss:$0 sm:$0xff]  ;;  %v180_v4 = vld [vmem:[#allocation4 + $0x1] ss:$0 sm:$0xff] }
  0x26   :  { %v276_v18 = vmov 683565275   ;;  %v277_v20 = vmov 2475754826   ;;  %v278_v22 = vmov 2131351028  }
  0x27   :  { %v41_v1 = vshrl.u32 %v40_v0, 7  ;;  %v279_v24 = vmov 2102212464   ;;  %v280_v26 = vmov 920167782   ;;  %s282_s2 = smov [#allocation9]  }
  0x28   :  { %v281_v33 = vmov 1326507024   ;;  %s169_s7 = sshll.u32 %s282_s2, 4  ;;  %s170_s7 = int_to_ptr.vmem [resolvable:$true] %s169_s7 }
  0x29   :  { %v45_v2 = vcvt.s32.f32 %v41_v1  ;;  %s246_s8 = scalar_lea.vmem %s170_s7, 128  ;;  %p251_p3 = scmp.lt.s32.totalorder %s170_s7, %s170_s7 }
  0x2a   :  { %p247_p2 = scmp.ne.s32.totalorder %s170_s7, %s246_s8  ;;  %p252_p4 = scmp.lt.s32.totalorder %s246_s8, %s246_s8 }
  0x2b   :  { %v50_v5 = vmul.f32 %v179_v3, %v45_v2 }
  0x2c   :  { %p253_p5 = por %p252_p4, %p251_p3 }
  0x2d   :  { %v327_v6 = vadd.f32 %v180_v4, %v50_v5 }
  0x2e   :  { %p254_p6 = pnand %p253_p5, %p247_p2 }
  0x2f   :  { %v59_v7 = vand.u32 2139095040, %v327_v6  ;;  %v56_v9 = vand.u32 2147483647, %v327_v6  ;;  %vm58_vm7 = vcmp.lt.s32.totalorder %v327_v6, 0  ;;  %vm148_vm12 = vweird.f32 %v327_v6 }
  0x31   :  { %v60_v8 = vshrl.u32 %v59_v7, 23  ;;  %v63_v12 = vand.u32 8388607, %v56_v9  ;;  %vm57_vm8 = vcmp.le.f32.partialorder %v56_v9, 0.7853982 }
  0x33   :  { %v181_v10 = vadd.s32 4294967169, %v60_v8  ;;  %v64_v15 = vor.u32 8388608, %v63_v12 }
  0x35   :  { %v66_v11 = vadd.s32 1, %v181_v10  ;;  %v104_v35 = vshll.u32 %v64_v15, 8 }
  0x37   :  { %vm67_vm0 = vcmp.gt.s32.totalorder %v66_v11, 0 }
  0x38   :  { %v68_v13 = vsel %vm67_vm0, %v66_v11, 0 }
  0x39   :  { %v70_v14 = vand.u32 31, %v68_v13  ;;  %v69_v16 = vshrl.u32 %v68_v13, 5 }
  0x3b   :  { %v71_v17 = vsub.s32 32, %v70_v14  ;;  %v73_v19 = vshll.u32 %v276_v18, %v70_v14  ;;  %v76_v21 = vshll.u32 %v277_v20, %v70_v14  ;;  %v79_v23 = vshll.u32 %v278_v22, %v70_v14 }
  0x3c   :  { %v82_v25 = vshll.u32 %v279_v24, %v70_v14  ;;  %v85_v27 = vshll.u32 %v280_v26, %v70_v14  ;;  %vm88_vm1 = vcmp.lt.s32.totalorder %v69_v16, 1  ;;  %vm91_vm2 = vcmp.lt.s32.totalorder %v69_v16, 4 }
  0x3d   :  { %v72_v28 = vshrl.u32 %v276_v18, %v71_v17  ;;  %v74_v29 = vshrl.u32 %v277_v20, %v71_v17  ;;  %v77_v30 = vshrl.u32 %v278_v22, %v71_v17  ;;  %v80_v31 = vshrl.u32 %v279_v24, %v71_v17 }
  0x3e   :  { %v83_v32 = vshrl.u32 %v280_v26, %v71_v17  ;;  %v86_v34 = vshrl.u32 %v281_v33, %v71_v17  ;;  %vm89_vm3 = vcmp.lt.s32.totalorder %v69_v16, 2  ;;  %vm90_vm4 = vcmp.lt.s32.totalorder %v69_v16, 3  ;;  %v160_v33 = vld [vmem:[#allocation7] sm:$0xff] }
  0x3f   :  { %v75_v36 = vor.u32 %v74_v29, %v73_v19  ;;  %v78_v37 = vor.u32 %v77_v30, %v76_v21  ;;  %v81_v38 = vor.u32 %v80_v31, %v79_v23 }
  0x40   :  { %v84_v39 = vor.u32 %v83_v32, %v82_v25  ;;  %v87_v40 = vor.u32 %v86_v34, %v85_v27 }
  0x41   :  { %v92_v41 = vsel %vm88_vm1, %v72_v28, %v75_v36  ;;  %v93_v42 = vsel %vm91_vm2, %v81_v38, 2102212464  ;;  %v96_v43 = vsel %vm88_vm1, %v75_v36, %v78_v37  ;;  %v100_v44 = vsel %vm88_vm1, %v78_v37, %v81_v38 }
  0x42   :  { %v94_v45 = vsel %vm90_vm4, %v78_v37, %v93_v42  ;;  %v97_v46 = vsel %vm91_vm2, %v84_v39, 920167782  ;;  %v101_v47 = vsel %vm91_vm2, %v87_v40, 1326507024 }
  0x43   :  { %v98_v48 = vsel %vm90_vm4, %v81_v38, %v97_v46  ;;  %v102_v49 = vsel %vm90_vm4, %v84_v39, %v101_v47  ;;  %v95_v50 = vsel %vm89_vm3, %v92_v41, %v94_v45 }
  0x44   :  { %v99_v51 = vsel %vm89_vm3, %v96_v43, %v98_v48  ;;  %v103_v52 = vsel %vm89_vm3, %v100_v44, %v102_v49  ;;  %v111_v57 = vmul.u32 %v104_v35, %v95_v50 }
  0x45   :  { %v333_v53 = vmul.u32.u64.low %v104_v35, %v103_v52  ;;  %v334_v54 = vmul.u32.u64.high %v104_v35, %v103_v52, %v333_v53  ;;  %v336_v55 = vmul.u32.u64.low %v104_v35, %v99_v51  ;;  %v337_v56 = vmul.u32.u64.high %v104_v35, %v99_v51, %v336_v55 }
  0x47   :  { %vm113_vm5 = vc.u32 %v334_v54, %v336_v55  ;;  %v114_v58 = vadd.s32 1, %v337_v56  ;;  %v112_v5 = vadd.s32 %v336_v55, %v334_v54 }
  0x49   :  { %v115_v59 = vsel %vm113_vm5, %v114_v58, %v337_v56 }
  0x4a   :  { %v116_v60 = vadd.s32 %v115_v59, %v111_v57 }
  0x4c   :  { %v117_v61 = vadd.s32 536870912, %v116_v60 }
  0x4e   :  { %v118_v62 = vshrl.u32 %v117_v61, 30 }
  0x50   :  { %v119_v63 = vshll.u32 %v118_v62, 30  ;;  %v142_v19 = vsub.s32 4, %v118_v62 }
  0x52   :  { %v120_v0 = vsub.s32 %v116_v60, %v119_v63  ;;  %v143_v22 = vsel %vm58_vm7, %v142_v19, %v118_v62 }
  0x53   :  { %v145_v25 = vsel %vm57_vm8, 0, %v143_v22 }
  0x54   :  { %v122_v1 = vsub.s32 0, %v120_v0  ;;  %v149_v26 = vadd.s32 3, %v145_v25 }
  0x56   :  { %v182_v2 = vmin.u32 %v122_v1, %v120_v0  ;;  %v150_v27 = vand.u32 3, %v149_v26 }
  0x58   :  { %v124_v3 = vclz %v182_v2  ;;  %vm155_vm9 = vcmp.eq.s32.totalorder %v150_v27, 2  ;;  %vm152_vm10 = vcmp.eq.s32.totalorder %v150_v27, 0  ;;  %vm151_vm11 = vcmp.lt.s32.totalorder %v150_v27, 2 }
  0x5a   :  { %v183_v4 = vadd.s32 4294967294, %v124_v3 }
  0x5c   :  { %vm184_vm6 = vcmp.lt.s32.totalorder %v183_v4, 0 }
  0x5d   :  { %v127_v7 = vsel %vm184_vm6, 0, %v183_v4 }
  0x5e   :  { %v128_v8 = vsub.s32 32, %v127_v7  ;;  %v129_v10 = vshll.u32 %v120_v0, %v127_v7  ;;  %v132_v11 = vsub.s32 4294967266, %v127_v7 }
  0x60   :  { %v130_v12 = vshrl.u32 %v112_v5, %v128_v8  ;;  %v133_v13 = vadd.s32 127, %v132_v11 }
  0x62   :  { %v131_v14 = vor.u32 %v130_v12, %v129_v10  ;;  %v134_v15 = vshll.u32 %v133_v13, 23 }
  0x64   :  { %v135_v16 = vor.u32 4788187, %v134_v15  ;;  %v138_v17 = vcvt.s32.f32 %v131_v14 }
  0x66   :  { %v136_v18 = vand.u32 2147483647, %v135_v16 }
  0x68   :  { %v139_v20 = vmul.f32 %v138_v17, %v136_v18 }
  0x6a   :  { %v140_v21 = vxor.u32 2147483648, %v139_v20 }
  0x6c   :  { %v141_v23 = vsel %vm58_vm7, %v140_v21, %v139_v20 }
  0x6d   :  { %v144_v24 = vsel %vm57_vm8, %v327_v6, %v141_v23 }
  0x6e   :  { %198 = vcosq.f32 %v144_v24 }
  0x6f   :  { %200 = vsinq.f32 %v144_v24 }
  0x78   :  { %v199_v28 = vpop.eup %198 }
  0x79   :  { %v201_v29 = vpop.eup %200  ;;  %v156_v30 = vxor.u32 2147483648, %v199_v28 }
  0x7a   :  { %v153_v31 = vxor.u32 2147483648, %v201_v29 }
  0x7b   :  { %v157_v9 = vsel %vm155_vm9, %v156_v30, %v201_v29 }
  0x7c   :  { %v154_v32 = vsel %vm152_vm10, %v199_v28, %v153_v31 }
  0x7d   :  { %v158_v34 = vsel %vm151_vm11, %v154_v32, %v157_v9 }
  0x7e   :  { %v159_v35 = vsel %vm148_vm12, nan, %v158_v34 }
  0x7f   :  { %v161_v36 = vadd.f32 %v160_v33, %v159_v35 }
  0x81   :  { %162 = vst [vmem:[#allocation9] sm:$0xff] %v161_v36 }
  0x82   :  { %257 = shalt.err (!%p254_p6)
}
  0x83   :  { %s258_s11 = scalar_lea.hbm %s363_s3, 128 }
  0x84   :  { %p259_p7 = scmp.ne.s32.totalorder %s363_s3, %s258_s11  ;;  %p262_p8 = scmp.lt.u32.totalorder %s258_s11, %s363_s3 }
  0x86   :  { %p264_p9 = pnand %p262_p8, %p259_p7 }
  0x88   :  { %267 = shalt.err (!%p264_p9)
}
  0x89   :  { %172 = dma.vmem_to_hbm [thread:$0]  %s170_s7, 128, %s363_s3, [#allocation6]  }
  0x8a   :  { %272 = dma.done.wait [#allocation6], 128  }
  0x8b   :  { %273 = vsyncadd [#allocation6], 4294967168 }
  0x8c   :  { %176 = vsyncpa [#allocation5], 1 }
  0x8d   :  { %177 = vsyncpa [#allocation8], 1 }
  0x8e   :  { %178 = vsyncpa [#allocation6], 1 }

</bundles_post_ra>
